<compile_context>
chip_gen: v7x
topology: tpu7x:2x2x1
jax: 0.10.0
libtpu: 0.0.40
codegen_flags: <defaults>
</compile_context>

<pallas_src>
import math

import jax
import jax.numpy as jnp
from jax.experimental import pallas as pl
from jax.experimental.pallas import tpu as pltpu


def _build_pe(max_seq_len: int, features_dim: int) -> jnp.ndarray:
    """Deterministic sinusoidal positional-encoding table, matches torch init."""
    position = jnp.arange(max_seq_len, dtype=jnp.float32)[:, None]            # (S, 1)
    div_term = jnp.exp(
        jnp.arange(0, features_dim, 2, dtype=jnp.float32)
        * (-(math.log(10000.0) / features_dim))
    )                                                                          # (D/2,)
    angles = position * div_term                                               # (S, D/2)
    pe = jnp.zeros((max_seq_len, features_dim), dtype=jnp.float32)
    pe = pe.at[:, 0::2].set(jnp.sin(angles))
    pe = pe.at[:, 1::2].set(jnp.cos(angles))
    return pe


def _pe_add_kernel(seq_ref, x_ref, pe_ref, o_ref):
    # seq_ref: SMEM (B,) int32 scalar-prefetch table of valid lengths
    # x_ref / o_ref: VMEM (BT, TS, D) tile; pe_ref: VMEM (TS, D) tile
    s_blk = pl.program_id(0)           # sequence-tile index (outer grid axis)
    b_blk = pl.program_id(1)           # batch-block index (inner grid axis)
    bt, ts, _ = x_ref.shape

    # Global row index of each row in this sequence tile, as a narrow (TS, 1) column.
    row = s_blk * ts + jax.lax.broadcasted_iota(jnp.int32, (ts, 1), 0)
    pe = pe_ref[...]

    # BT is a small static int (<=16): unrolled loop, one SMEM scalar read per batch row.
    for i in range(bt):
        len_i = seq_ref[b_blk * bt + i]
        xi = x_ref[i, :, :]
        o_ref[i, :, :] = jnp.where(row < len_i, xi + pe, xi)


def _plan_tiles(B: int, S: int, D: int, itemsize: int):
    """Pick (ts, bt, vmem_limit): sequence-tile rows, batch-block rows, VMEM limit.

    Memory-bound add: aim for >= ~2-8 MiB of x per grid step to amortize ~0.35 us
    per-step overhead, within a generation-aware VMEM budget (v7x has only 64 MiB).
    """
    sublane = max(8, 32 // itemsize)           # 8 for f32, 16 for bf16, 32 for int8/fp8
    row_bytes = D * itemsize

    try:
        vmem_cap = int(pltpu.get_tpu_info().vmem_capacity_bytes)  # 128 MiB v5e/v6e, 64 MiB v7x
    except Exception:
        vmem_cap = 64 * 1024 * 1024            # smallest across supported gens -> always safe
    budget = min(vmem_cap // 2, 64 * 1024 * 1024)        # bytes for our (double-buffered) tiles
    vmem_limit = min((vmem_cap * 3) // 4, 96 * 1024 * 1024)

    # Per-x-tile byte target: ~6 live buffers (2x x-in, 2x out, 2x pe).
    target = max(row_bytes, min(8 * 1024 * 1024, budget // 6))

    rows = max(sublane, ((target // row_bytes) // sublane) * sublane)
    if rows >= S:
        ts = S                                  # full-extent seq block: always layout-legal
        bt = max(1, min(B, 16, target // max(S * row_bytes, 1)))  # cap unroll at 16
        while B % bt != 0:                      # keep batch blocks even (no ragged SMEM reads)
            bt -= 1
    else:
        ts = rows                               # multiple of `sublane`; last s-block may be ragged
        bt = 1

    # Megacore (v7x has 2 TensorCores): keep >= ~4 grid steps when the problem allows.
    def steps(ts_, bt_):
        return pl.cdiv(S, ts_) * pl.cdiv(B, bt_)

    while bt > 1 and steps(ts, bt) < 4:
        bt = max(1, bt // 2)
        while B % bt != 0:
            bt -= 1
    while (ts > sublane and steps(ts, bt) < 4
           and (ts // 2) * row_bytes * bt >= (1 << 20)):   # only split while tiles stay >=1 MiB
        ts = max(sublane, ((ts // 2) // sublane) * sublane)

    return ts, bt, vmem_limit


def _positional_encoding_forward(x: jnp.ndarray, seq_len: jnp.ndarray,
                                 pe: jnp.ndarray) -> jnp.ndarray:
    """x: (B, S, D), seq_len: (B,) ints, pe: (>=S, D). Returns x with PE added on
    rows [0, seq_len[b]) of each batch element (PyTorch forward semantics)."""
    B, S, D = x.shape
    assert pe.shape[0] >= S and pe.shape[1] == D, "pe table must cover the sequence"
    pe = pe[:S].astype(x.dtype)                  # same-dtype add (no converts on VPU)
    seq_len = seq_len.astype(jnp.int32)
    itemsize = jnp.dtype(x.dtype).itemsize
    # TODO(synk): for D % 128 != 0, fold pairs of sequence rows into the lane dim
    # (reshape x to (B, S/2, 2D) with an interleaved pe) to keep stores lane-dense.

    ts, bt, vmem_limit = _plan_tiles(B, S, D, itemsize)
    num_s = pl.cdiv(S, ts)                       # Python ints (shapes are static)
    num_b = pl.cdiv(B, bt)

    grid_spec = pltpu.PrefetchScalarGridSpec(
        num_scalar_prefetch=1,                   # seq_len lands in SMEM
        # s-tiles OUTER, batch INNER: pe's block index only changes with s, so the
        # pe table is DMA'd once per s-tile (S*D total), not once per (s, b).
        grid=(num_s, num_b),
        in_specs=[
            pl.BlockSpec((bt, ts, D), lambda s, b, seq: (b, s, 0)),
            pl.BlockSpec((ts, D), lambda s, b, seq: (s, 0)),
        ],
        out_specs=pl.BlockSpec((bt, ts, D), lambda s, b, seq: (b, s, 0)),
    )

    return pl.pallas_call(
        _pe_add_kernel,
        out_shape=jax.ShapeDtypeStruct((B, S, D), x.dtype),
        grid_spec=grid_spec,
        # x is operand 1 (after the scalar-prefetch seq_len); alias it to the output so,
        # combined with donation in the wrapper, the update happens in place.
        input_output_aliases={1: 0},
        compiler_params=pltpu.CompilerParams(
            dimension_semantics=("parallel", "parallel"),
            vmem_limit_bytes=vmem_limit,
        ),
    )(seq_len, x, pe)


positional_encoding_forward = jax.jit(_positional_encoding_forward, donate_argnums=(0,))


if __name__ == "__main__":
    # Small demo shapes consistent with the module: batch=2, max_seq_len=8, D=128
    # (lane-dense last dim for f32).
    B, S, D = 2, 8, 128
    key = jax.random.PRNGKey(0)
    x = jax.random.normal(key, (B, S, D), dtype=jnp.float32)
    seq_len = jnp.array([5, 8], dtype=jnp.int32)   # per-batch valid lengths
    pe = _build_pe(S, D)

    # Reference (plain JAX, mirrors the PyTorch loop) — computed BEFORE the kernel
    # call since x is donated to the kernel.
    ref = x
    for i in range(B):
        L = int(seq_len[i])
        ref = ref.at[i, :L, :].add(pe[:L, :])
    ref = jax.block_until_ready(ref)

    out = positional_encoding_forward(x, seq_len, pe)
    out = jax.block_until_ready(out)

    assert jnp.allclose(out, ref, atol=1e-6), "mismatch vs reference"
    print("KERNEL_OK")
</pallas_src>

<mosaic_0001>
module attributes {stable_mosaic.version = 11 : i64} {
  func.func @_pe_add_kernel(%arg0: i32, %arg1: i32, %arg2: memref<2xi32, #tpu.memory_space<smem>>, %arg3: memref<1x8x128xf32, #tpu.memory_space<vmem>>, %arg4: memref<8x128xf32, #tpu.memory_space<vmem>>, %arg5: memref<1x8x128xf32, #tpu.memory_space<vmem>>) attributes {dimension_semantics = [#tpu.dimension_semantics<parallel>, #tpu.dimension_semantics<parallel>], iteration_bounds = array<i64: 1, 2>, scalar_prefetch = 1 : i64, scratch_operands = 0 : i64, tpu.core_type = #tpu.core_type<tc>, window_params = [{transform_indices = @transform_0, window_bounds = array<i64: 1, 8, 128>}, {transform_indices = @transform_1, window_bounds = array<i64: 8, 128>}, {transform_indices = @transform_2, window_bounds = array<i64: 1, 8, 128>}]} {
    %c8_i32 = arith.constant 8 : i32
    %0 = arith.muli %arg0, %c8_i32 : i32
    %1 = tpu.iota {dimensions = array<i32: 0>} : vector<8x1xi32>
    %2 = vector.broadcast %0 : i32 to vector<8x1xi32>
    %3 = arith.addi %2, %1 : vector<8x1xi32>
    %c0 = arith.constant 0 : index
    %c0_0 = arith.constant 0 : index
    %4 = vector.load %arg4[%c0, %c0_0] : memref<8x128xf32, #tpu.memory_space<vmem>>, vector<8x128xf32>
    %c1_i32 = arith.constant 1 : i32
    %5 = arith.muli %arg1, %c1_i32 : i32
    %c0_i32 = arith.constant 0 : i32
    %6 = arith.addi %5, %c0_i32 : i32
    %7 = arith.index_cast %6 : i32 to index
    %8 = memref.load %arg2[%7] : memref<2xi32, #tpu.memory_space<smem>>
    %c0_1 = arith.constant 0 : index
    %c0_2 = arith.constant 0 : index
    %c0_3 = arith.constant 0 : index
    %9 = vector.load %arg3[%c0_1, %c0_2, %c0_3] : memref<1x8x128xf32, #tpu.memory_space<vmem>>, vector<1x8x128xf32>
    %10 = vector.shape_cast %9 : vector<1x8x128xf32> to vector<8x128xf32>
    %11 = vector.broadcast %8 : i32 to vector<8x1xi32>
    %12 = arith.cmpi slt, %3, %11 : vector<8x1xi32>
    %13 = arith.addf %10, %4 : vector<8x128xf32>
    %14 = vector.shape_cast %12 : vector<8x1xi1> to vector<8x1xi1>
    %15 = vector.broadcast %14 : vector<8x1xi1> to vector<8x128xi1>
    %16 = arith.select %15, %13, %10 : vector<8x128xi1>, vector<8x128xf32>
    %c0_4 = arith.constant 0 : index
    %c0_5 = arith.constant 0 : index
    %c0_6 = arith.constant 0 : index
    %17 = vector.load %arg5[%c0_4, %c0_5, %c0_6] : memref<1x8x128xf32, #tpu.memory_space<vmem>>, vector<1x8x128xf32>
    %18 = vector.shape_cast %17 : vector<1x8x128xf32> to vector<8x128xf32>
    %19 = vector.shape_cast %16 : vector<8x128xf32> to vector<1x8x128xf32>
    tpu.vector_store %arg5[%c0_4, %c0_5, %c0_6], %19 {strides = array<i32>} : memref<1x8x128xf32, #tpu.memory_space<vmem>>, vector<1x8x128xf32>,
    return
  }
  func.func @transform_0(%arg0: i32, %arg1: i32, %arg2: memref<2xi32, #tpu.memory_space<smem>>) -> (i32, i32, i32) {
    %c0_i32 = arith.constant 0 : i32
    %c0_i32_0 = arith.constant 0 : i32
    return %arg1, %arg0, %c0_i32 : i32, i32, i32
  }
  func.func @transform_1(%arg0: i32, %arg1: i32, %arg2: memref<2xi32, #tpu.memory_space<smem>>) -> (i32, i32) {
    %c0_i32 = arith.constant 0 : i32
    %c0_i32_0 = arith.constant 0 : i32
    return %arg0, %c0_i32 : i32, i32
  }
  func.func @transform_2(%arg0: i32, %arg1: i32, %arg2: memref<2xi32, #tpu.memory_space<smem>>) -> (i32, i32, i32) {
    %c0_i32 = arith.constant 0 : i32
    %c0_i32_0 = arith.constant 0 : i32
    return %arg1, %arg0, %c0_i32 : i32, i32, i32
  }
}

</mosaic_0001>

<bundles_post_ra>
// kernel: _positional_encoding_forward.1
= control target key start
LH: loop header
LB: loop body
LE: loop exit
PB: predicated region body
PF: predicated region fallthrough
CT: control target
= control target key end

     0   :  { %s818_s0 = inlined_call_operand.vmem [shape: s32[2], index: 0, kind: input, shape index: {}]   ;;  %s819_s1 = inlined_call_operand.hbm [shape: f32[2,8,128], index: 1, kind: input, shape index: {}, may-alias: {1,3}]   ;;  %s820_s2 = inlined_call_operand.hbm [shape: f32[8,128], index: 2, kind: input, shape index: {}]   ;;  %s821_s3 = inlined_call_operand.hbm [shape: f32[2,8,128], index: 3, kind: output, shape index: {}, may-alias: {1,3}]  }
   0x1   :  { %s8_s14 = sshll.u32 %s818_s0, 4  ;;  %s9_s14 = int_to_ptr.vmem [resolvable:$true] %s8_s14 }
   0x2   :  { %s414_s15 = scalar_lea.vmem %s9_s14, 16  ;;  %p419_p1 = scmp.lt.s32.totalorder %s9_s14, %s9_s14 }
   0x3   :  { %p415_p0 = scmp.ne.s32.totalorder %s9_s14, %s414_s15  ;;  %p420_p2 = scmp.lt.s32.totalorder %s414_s15, %s414_s15 }
   0x5   :  { %p421_p3 = por %p420_p2, %p419_p1 }
   0x7   :  { %p422_p4 = pnand %p421_p3, %p415_p0 }
   0x9   :  { %425 = shalt.err (!%p422_p4)  }
   0xa   :  { %s574_s16 = smov [#allocation3]  }
   0xb   :  { %11 = dma.vmem_to_smem %s9_s14, 16, %s574_s16, [#allocation2] }
   0xc   :  { %536 = dma.done.wait [#allocation2], 16 }
   0xd   :  { %537 = vsyncadd [#allocation2], 4294967280 }
   0xe   :  { %13 = sfence }
   0xf   :  { %14 = vsyncpa [#allocation5], 0 }
  0x10   :  { %16 = vsyncpa [#allocation5 + $0x1], 0 }
  0x11   :  { %17 = vsyncpa [#allocation8], 0 }
  0x12   :  { %18 = vsyncpa [#allocation6], 0 }
  0x13   :  { %20 = vsyncpa [#allocation6 + $0x1], 0  ;;  %s601_s17 = smov 0   ;;  %s603_s0 = smov 0  }
  0x14   :  { %s605_s18 = smov 0   ;;  %s607_s19 = smov 0  }
  0x15   :  { %s609_s20 = smov 0   ;;  %s611_s21 = smov 0  }
  0x16 LB: > { %s325_s22 = sadd.s32 4294967295, %s572_s21   ;;  %s326_s23 = sadd.s32 4294967294, %s572_s21   ;;  %s572_s21 = sphi %s611_s21, %s26_s21   ;;  %s568_s20 = sphi %s609_s20, %s846_s20   ;;  %s564_s19 = sphi %s607_s19, %s845_s19   ;;  %s560_s18 = sphi %s605_s18, %s844_s18   ;;  %s556_s0 = sphi %s603_s0, %s843_s0   ;;  %s552_s17 = sphi %s601_s17, %s842_s17  }
  0x17   : > { %p60_p5 = scmp.ne.s32.totalorder %s556_s0, %s552_s17  ;;  %p635_p6 = scmp.eq.s32.totalorder %s325_s22, 0 }
  0x18   : > { %p639_p7 = scmp.eq.s32.totalorder %s325_s22, 1  ;;  %p118_p8 = scmp.eq.s32.totalorder %s326_s23, 1 }
  0x19   : > { %s826_s24 = scalar_select %p635_p6, 1, 0 }
  0x1a   : > { %s827_s25 = scalar_select %p639_p7, 1, 0 }
  0x1b   : > { %p645_p9 = por %p635_p6, %p60_p5  ;;  %p327_p10 = scmp.ge.s32.totalorder %s572_s21, 1 }
  0x1c   : > { %p650_p11 = por %p118_p8, %p60_p5  ;;  %p125_p12 = scmp.lt.s32.totalorder %s572_s21, 3 }
  0x1d   : > { %s828_s26 = scalar_select %p645_p9, 1, 0 }
  0x1e   : > { %s829_s27 = scalar_select %p650_p11, 1, 0 }
  0x1f   : > { %p655_p13 = pnand %p327_p10, %p125_p12  ;;  %s575_s29 = smov [#allocation7]  }
  0x20   : > { %s140_s30 = sshll.u32 %s575_s29, 4  ;;  %s35_s5 = sadd.s32 1, %s568_s20  ;;  %s141_s30 = int_to_ptr.vmem [resolvable:$true] %s140_s30 }
  0x21   : > { %s830_s28 = scalar_select %p655_p13, 1, 0 }
  0x22   : > { %p348_p1 = pneg %p655_p13  ;;  %s47_s6 = sadd.s32 1, %s560_s18 }
  0x23   : > { %p670_p3 = scmp.ge.s32.totalorder %s35_s5, 2  ;;  %s426_s10 = scalar_lea.hbm %s820_s2, 128 }
  0x24   : > { %p664_p2 = pnand %p348_p1, %p635_p6  ;;  %p427_p4 = scmp.ne.s32.totalorder %s820_s2, %s426_s10 }
  0x25   : > { %s832_s7 = scalar_select %p670_p3, 1, 0 }
  0x26   : > { %p428_p5 = pneg %p664_p2  ;;  %p433_p12 = scmp.lt.u32.totalorder %s426_s10, %s820_s2 }
  0x28   : > { %p429_p8 = pnand %p428_p5, %p427_p4 }
  0x2a   : > { %p430_p10 = pneg %p429_p8 }
  0x2c   : > { %p435_p1 = pnand %p433_p12, %p430_p10 }
  0x2e   : > { %438 = shalt.err (!%p435_p1)
}
  0x2f   : > { %s439_s15 = scalar_lea.vmem %s141_s30, 128  ;;  %p447_p9 = scmp.lt.s32.totalorder %s141_s30, %s141_s30 }
  0x30   : > { %p440_p0 = scmp.ne.s32.totalorder %s141_s30, %s439_s15  ;;  %p448_p13 = scmp.lt.s32.totalorder %s439_s15, %s439_s15 }
  0x32   : > { %p442_p11 = pnand %p440_p0, %p428_p5  ;;  %p449_p7 = por %p448_p13, %p447_p9 }
  0x34   : > { %p443_p6 = pneg %p442_p11 }
  0x36   : > { %p450_p3 = pnand %p449_p7, %p443_p6 }
  0x38   : > { %453 = shalt.err (!%p450_p3)
}
  0x39   : > { %351 = dma.hbm_to_vmem [thread:$0]  (!%p664_p2), %s820_s2, 128, %s141_s30, [#allocation8]  }
  0x3a   : > { %p833_p9 = scmp.ne.s32.totalorder %s832_s7, 0  ;;  %p54_p6 = scmp.ne.s32.totalorder %s560_s18, %s556_s0 }
  0x3b   : > { %p55_p7 = scmp.eq.s32.totalorder %s572_s21, 0  ;;  %p361_p11 = scmp.lt.s32.totalorder %s572_s21, 2 }
  0x3c   : > { %s848_s5 = smov (%p833_p9, %s35_s5), 0  ;;  %p834_p3 = scmp.ne.s32.totalorder %s827_s25, 0 }
  0x3d   : > { %s42_s23 = ssub.s32 %s568_s20, %s848_s5  ;;  %p56_p0 = por %p55_p7, %p54_p6 }
  0x3e   : > { %p45_p13 = scmp.eq.s32.totalorder %s42_s23, 0  ;;  %p702_p4 = por %p834_p3, %p54_p6 }
  0x3f   : > { %s151_s4 = sand.u32 1, %s560_s18   ;;  %s331_s7 = sshll.u32 %s568_s20, 7 }
  0x40   : > { %s710_s8 = scalar_select %p45_p13, %s560_s18, %s47_s6  }
  0x41   : > { %s330_s30 = sshll.u32 %s151_s4, 3  ;;  %s716_s11 = scalar_lea.hbm %s819_s1, %s331_s7 }
  0x42   : > { %s155_s25 = scalar_lea.vmem [#allocation4], %s330_s30  ;;  %p720_p2 = pnand %p361_p11, %p56_p0 }
  0x43   : > { %s163_s12 = sshll.u32 %s155_s25, 4  ;;  %s152_s6 = scalar_lea.sflag [#allocation5], %s151_s4  ;;  %s718_s12 = int_to_ptr.vmem [resolvable:$true] %s163_s12 }
  0x44   : > { %s454_s14 = scalar_lea.hbm %s716_s11, 128  ;;  %p456_p8 = pneg %p720_p2 }
  0x45   : > { %p455_p5 = scmp.ne.s32.totalorder %s716_s11, %s454_s14  ;;  %s459_s22 = scalar_lea.hbm %s819_s1, 256 }
  0x46   : > { %p460_p1 = scmp.lt.u32.totalorder %s716_s11, %s819_s1  ;;  %p461_p9 = scmp.lt.u32.totalorder %s459_s22, %s454_s14 }
  0x47   : > { %p457_p10 = pnand %p456_p8, %p455_p5  ;;  %p463_p7 = scmp.lt.u32.totalorder %s454_s14, %s716_s11 }
  0x48   : > { %p462_p6 = por %p461_p9, %p460_p1 }
  0x49   : > { %p458_p12 = pneg %p457_p10 }
  0x4a   : > { %p464_p11 = por %p463_p7, %p462_p6 }
  0x4c   : > { %p465_p13 = pnand %p464_p11, %p458_p12 }
  0x4e   : > { %468 = shalt.err (!%p465_p13)
}
  0x4f   : > { %s469_s4 = scalar_lea.vmem %s718_s12, 128  ;;  %s576_s7 = smov [#allocation4]  }
  0x50   : > { %p470_p0 = scmp.ne.s32.totalorder %s718_s12, %s469_s4  ;;  %s474_s9 = sshll.u32 %s576_s7, 4  ;;  %s475_s9 = int_to_ptr.vmem [resolvable:$false] %s474_s9 }
  0x51   : > { %s476_s10 = scalar_lea.vmem %s475_s9, 256  ;;  %p477_p10 = scmp.lt.s32.totalorder %s718_s12, %s475_s9 }
  0x52   : > { %p472_p3 = pnand %p470_p0, %p456_p8  ;;  %p478_p1 = scmp.lt.s32.totalorder %s476_s10, %s469_s4 }
  0x54   : > { %p473_p5 = pneg %p472_p3  ;;  %p479_p9 = por %p478_p1, %p477_p10 }
  0x56   : > { %p480_p6 = pnand %p479_p9, %p473_p5 }
  0x58   : > { %483 = shalt.err (!%p480_p6)
}
  0x59   : > { %355 = dma.hbm_to_vmem [thread:$0]  (!%p720_p2), %s716_s11, 128, %s718_s12, %s152_s6  }
  0x5a   : > { %p837_p12 = scmp.ne.s32.totalorder %s830_s28, 0 }
  0x5b   : > { %s752_s25 = sand.u32 (!%p837_p12), 1, %s556_s0   ;;  %p838_p8 = scmp.ne.s32.totalorder (!%p837_p12), %s828_s26, 0 }
  0x5c   : > { %172 = sbr.rel (%p837_p12) target bundleno = 128 (0x80), region = 28  ;;  %s333_s14 = sshll.u32 (!%p837_p12), %s752_s25, 3 }
  0x5d   : > { %s175_s15 = scalar_lea.sflag (!%p837_p12), [#allocation5], %s752_s25  ;;  %s178_s16 = scalar_lea.vmem (!%p837_p12), [#allocation4], %s333_s14 }
  0x63   : > { %539 = dma.done.wait (%p838_p8), %s175_s15, 128  }
  0x64   : > { %541 = vsyncadd (%p838_p8), %s175_s15, 4294967168  ;;  %p839_p7 = scmp.ne.s32.totalorder %s826_s24, 0 }
  0x66   : > { %543 = dma.done.wait (%p839_p7), [#allocation8], 128  }
  0x67   : > { %545 = vsyncadd (%p839_p7), [#allocation8], 4294967168  ;;  %v204_v0 = vlaneseq  ;;  %s209_s28 = sld [smem:[#allocation3 + %s564_s19]]  ;;  %s202_s11 = scalar_lea.vmem [#allocation9], %s333_s14  ;;  %v208_v2 = vld [vmem:[#allocation7] sm:$0xff]  ;;  %v210_v3 = vld [vmem:[%s178_s16] sm:$0xff] }
  0x68   : > { %s233_s12 = sshll.u32 %s202_s11, 4  ;;  %s337_s13 = sshll.u32 %s564_s19, 7  ;;  %v213_v5 = vadd.f32 %v210_v3, %v208_v2  ;;  %s766_s12 = int_to_ptr.vmem [resolvable:$true] %s233_s12 }
  0x69   : > { %v205_v1 = vshrl.u32 %v204_v0, 7  ;;  %s771_s6 = scalar_lea.hbm %s821_s3, %s337_s13  ;;  %s219_s22 = scalar_lea.sflag [#allocation6], %s752_s25 }
  0x6a   : > { %s484_s23 = scalar_lea.vmem %s766_s12, 128  ;;  %s577_s19 = smov [#allocation9]  }
  0x6b   : > { %p485_p2 = scmp.ne.s32.totalorder %s766_s12, %s484_s23  ;;  %s488_s30 = sshll.u32 %s577_s19, 4  ;;  %s489_s30 = int_to_ptr.vmem [resolvable:$false] %s488_s30 }
  0x6c   : > { %s490_s4 = scalar_lea.vmem %s489_s30, 256  ;;  %p491_p0 = scmp.lt.s32.totalorder %s766_s12, %s489_s30 }
  0x6d   : > { %v211_v4 = vstv %s209_s28  ;;  %p486_p11 = pnand %p485_p2, %p702_p4  ;;  %p492_p3 = scmp.lt.s32.totalorder %s490_s4, %s484_s23 }
  0x6e   : > { %vm212_vm0 = vcmp.lt.s32.totalorder %v205_v1, %v211_v4 }
  0x6f   : > { %v216_v6 = vsel %vm212_vm0, %v213_v5, %v210_v3  ;;  %p487_p13 = pneg %p486_p11  ;;  %p493_p5 = por %p492_p3, %p491_p0 }
  0x70   : > { %217 = vst [vmem:[%s202_s11] sm:$0xff] %v216_v6 }
  0x71   : > { %p494_p10 = pnand %p493_p5, %p487_p13 }
  0x73   : > { %497 = shalt.err (!%p494_p10)
}
  0x74   : > { %s498_s7 = scalar_lea.hbm %s771_s6, 128  ;;  %s502_s25 = scalar_lea.hbm %s821_s3, 256 }
  0x75   : > { %p499_p1 = scmp.ne.s32.totalorder %s771_s6, %s498_s7  ;;  %p503_p12 = scmp.lt.u32.totalorder %s771_s6, %s821_s3 }
  0x76   : > { %p504_p8 = scmp.lt.u32.totalorder %s502_s25, %s498_s7  ;;  %p506_p2 = scmp.lt.u32.totalorder %s498_s7, %s771_s6 }
  0x77   : > { %p500_p9 = pnand %p499_p1, %p702_p4 }
  0x78   : > { %p505_p7 = por %p504_p8, %p503_p12 }
  0x79   : > { %p501_p6 = pneg %p500_p9 }
  0x7a   : > { %p507_p11 = por %p506_p2, %p505_p7 }
  0x7c   : > { %p508_p13 = pnand %p507_p11, %p501_p6 }
  0x7e   : > { %511 = shalt.err (!%p508_p13)
}
  0x7f   : > { %346 = dma.vmem_to_hbm [thread:$0]  (%p702_p4), %s766_s12, 128, %s771_s6, %s219_s22  }
  0x80 PF: > { %s245_s16 = sand.u32 1, %s552_s17   ;;  %p840_p0 = scmp.ne.s32.totalorder %s829_s27, 0 }
  0x81   : > { %p841_p3 = scmp.ge.s32.totalorder %s572_s21, 2  ;;  %s246_s28 = scalar_lea.sflag [#allocation6], %s245_s16 }
  0x83   : > { %p357_p5 = pnand %p841_p3, %p840_p0 }
  0x85   : > { %547 = dma.done.wait (!%p357_p5), %s246_s28, 128  }
  0x86   : > { %549 = vsyncadd (!%p357_p5), %s246_s28, 4294967168  ;;  %s26_s21 = sadd.s32 1, %s572_s21   ;;  %s842_s17 = smov %s556_s0 }
  0x87   : > { %p23_p10 = scmp.ge.s32.totalorder %s26_s21, 4   ;;  %s843_s0 = smov %s560_s18 }
  0x88   : > { %s844_s18 = smov %s710_s8  ;;  %s845_s19 = smov %s568_s20 }
  0x89   : > { %s846_s20 = smov %s848_s5  ;;  %25 = sbr.rel (!%p23_p10) target bundleno = 22 (0x16), region = 78 }
  0x90   :  { %251 = vsyncpa [#allocation5], 1 }
  0x91   :  { %253 = vsyncpa [#allocation5 + $0x1], 1 }
  0x92   :  { %254 = vsyncpa [#allocation8], 1 }
  0x93   :  { %255 = vsyncpa [#allocation6], 1 }
  0x94   :  { %257 = vsyncpa [#allocation6 + $0x1], 1 }

</bundles_post_ra>
